<compile_context>
chip_gen: v7x
topology: tpu7x:2x2x1
jax: 0.10.0
libtpu: 0.0.40
codegen_flags: <defaults>
</compile_context>

<pallas_src>
import functools
import math

import jax
import jax.numpy as jnp
from jax.experimental import pallas as pl
from jax.experimental.pallas import tpu as pltpu


def _vae_loss_kernel(x_ref, rx_ref, mu_ref, lv_ref, part_ref, acc_ref, *,
                     n_elem, batch_rows, row_block, blocks_per_part,
                     mask_rows, fold_rows):
    p = pl.program_id(0)   # partial / TensorCore axis ("parallel")
    i = pl.program_id(1)   # streaming axis ("arbitrary")

    @pl.when(i == 0)
    def _init():
        acc_ref[...] = jnp.zeros_like(acc_ref)

    # --- hot loop: elementwise BCE terms, accumulated in f32 (VPU + EUP) ---
    x = x_ref[...].astype(jnp.float32)
    r = rx_ref[...].astype(jnp.float32)
    # PyTorch's binary_cross_entropy clamps the log terms at -100.
    log_r = jnp.maximum(jnp.log(r), -100.0)
    log_1mr = jnp.maximum(jnp.log(1.0 - r), -100.0)
    # -(x*log r + (1-x)*log(1-r)) == -(log(1-r) + x*(log r - log(1-r)))
    term = -(log_1mr + x * (log_r - log_1mr))

    if mask_rows:
        # Rows past the real batch (partial last block / clamped duplicate
        # blocks) hold undefined VMEM data: zero them BEFORE accumulation.
        blk = p * blocks_per_part + i          # intended (unclamped) block id
        row = blk * row_block + jax.lax.broadcasted_iota(jnp.int32, term.shape, 0)
        term = jnp.where(row < batch_rows, term, 0.0)

    if fold_rows:
        # Layout-free reshape (rb, D) -> (rb//8, 8, D); summing the leading
        # axis is pure vreg adds (VPU), accumulator shrinks to (8, D).
        g = term.shape[0] // 8
        acc_ref[...] += term.reshape(g, 8, term.shape[1]).sum(axis=0)
    else:
        acc_ref[...] += term

    # --- epilogue: one XLU reduction per partial; KLD only on partial 0 ---
    @pl.when(i == pl.num_programs(1) - 1)
    def _finalize():
        bce_part = jnp.sum(acc_ref[...]) / jnp.float32(n_elem)   # 'mean' share

        @pl.when(p == 0)
        def _with_kld():
            mu = mu_ref[...].astype(jnp.float32)
            lv = lv_ref[...].astype(jnp.float32)
            kld = -0.5 * jnp.sum(1.0 + lv - mu * mu - jnp.exp(lv))
            part_ref[0, 0] = bce_part + kld

        @pl.when(p != 0)
        def _bce_only():
            part_ref[0, 0] = bce_part


def vae_loss(x, mu, log_var, recon_x, *,
             target_block_bytes=4 * 1024 * 1024, num_partials=2):
    """x, recon_x: (B, ...) in [0, 1]; mu, log_var: (B, Z). Returns scalar."""
    B = x.shape[0]
    D = math.prod(x.shape[1:])
    n_elem = B * D

    # Free, contiguous reshape -> lane-major (B, D) slab.  NO padding pass.
    x2d = x.reshape(B, D)
    r2d = recon_x.reshape(B, D)

    # Row block sized for ~target_block_bytes per streamed input; must be a
    # multiple of 8 (sublane) or equal to the full batch dim.
    bytes_per_row = D * x.dtype.itemsize
    rows_for_target = max(1, target_block_bytes // bytes_per_row)
    if rows_for_target >= B or B <= 8:
        row_block = B
    else:
        row_block = max(8, min((rows_for_target // 8) * 8, (B // 8) * 8))

    n_row_blocks = pl.cdiv(B, row_block)
    P = num_partials if n_row_blocks >= num_partials else 1
    blocks_per_part = pl.cdiv(n_row_blocks, P)
    grid = (P, blocks_per_part)
    last_blk = n_row_blocks - 1

    mask_rows = (B % row_block != 0) or (P * blocks_per_part != n_row_blocks)
    fold_rows = (row_block % 8 == 0) and (row_block > 8)
    acc_rows = 8 if fold_rows else row_block

    if P * blocks_per_part == n_row_blocks:
        def slab_map(p, i):
            return (p * blocks_per_part + i, 0)
    else:
        def slab_map(p, i):
            # Clamp overflow iterations to the last valid block; their rows
            # are fully masked in-kernel so the duplicated data is harmless.
            return (jnp.minimum(p * blocks_per_part + i, last_blk), 0)

    cost = pl.CostEstimate(
        flops=int(7 * n_elem + 4 * mu.size),
        transcendentals=int(2 * n_elem + mu.size),
        bytes_accessed=int(n_elem * (x.dtype.itemsize + recon_x.dtype.itemsize)
                           + mu.size * mu.dtype.itemsize
                           + log_var.size * log_var.dtype.itemsize + 4 * P),
    )

    partials = pl.pallas_call(
        functools.partial(_vae_loss_kernel, n_elem=n_elem, batch_rows=B,
                          row_block=row_block, blocks_per_part=blocks_per_part,
                          mask_rows=mask_rows, fold_rows=fold_rows),
        out_shape=jax.ShapeDtypeStruct((P, 1), jnp.float32),
        grid_spec=pltpu.PrefetchScalarGridSpec(
            num_scalar_prefetch=0,
            grid=grid,
            in_specs=[
                pl.BlockSpec((row_block, D), slab_map),            # x slab
                pl.BlockSpec((row_block, D), slab_map),            # recon slab
                pl.BlockSpec(mu.shape, lambda p, i: (0, 0)),       # mu (resident)
                pl.BlockSpec(log_var.shape, lambda p, i: (0, 0)),  # log_var (resident)
            ],
            out_specs=pl.BlockSpec((1, 1), lambda p, i: (p, 0),
                                   memory_space=pltpu.MemorySpace.SMEM),
            scratch_shapes=[pltpu.VMEM((acc_rows, D), jnp.float32)],
        ),
        compiler_params=pltpu.CompilerParams(
            dimension_semantics=("parallel", "arbitrary"),
            vmem_limit_bytes=32 * 1024 * 1024,
        ),
        cost_estimate=cost,
    )(x2d, r2d, mu, log_var)

    # partial[0] already carries the KLD term; sum of per-partial BCE means
    # equals the global BCE mean.
    return jnp.sum(partials) / jnp.float32(B)


def _reference(x, mu, log_var, recon_x):
    B = x.shape[0]
    xf = x.astype(jnp.float32)
    rf = recon_x.astype(jnp.float32)
    log_r = jnp.maximum(jnp.log(rf), -100.0)
    log_1mr = jnp.maximum(jnp.log(1.0 - rf), -100.0)
    bce = jnp.mean(-(xf * log_r + (1.0 - xf) * log_1mr))
    lv = log_var.astype(jnp.float32)
    muf = mu.astype(jnp.float32)
    kld = -0.5 * jnp.sum(1.0 + lv - muf * muf - jnp.exp(lv))
    return (bce + kld) / B


if __name__ == "__main__":
    key = jax.random.PRNGKey(0)
    k1, k2, k3, k4, k5, k6, k7, k8 = jax.random.split(key, 8)

    # Test 1: module-spec shapes, default blocks (single grid step, P=1).
    B, C, H, W, Z = 2, 4, 16, 16, 32
    x = jax.random.uniform(k1, (B, C, H, W), dtype=jnp.float32)                 # targets in [0,1]
    recon_x = jax.nn.sigmoid(jax.random.normal(k2, (B, C, H, W), jnp.float32))  # probs in (0,1)
    mu = jax.random.normal(k3, (B, Z), jnp.float32)
    log_var = jax.random.normal(k4, (B, Z), jnp.float32) * 0.1

    loss = vae_loss(x, mu, log_var, recon_x)
    jax.block_until_ready(loss)
    ref = _reference(x, mu, log_var, recon_x)
    assert jnp.allclose(loss, ref, rtol=1e-5, atol=1e-5), (loss, ref)

    # Test 2: non-dividing batch (B=37) + tiny forced block -> multi-step
    # streaming grid, 2 parallel partials, clamped duplicate block and a
    # partial last block (exercises the in-kernel row mask, no padding).
    B2, C2, H2, W2 = 37, 3, 16, 16
    x2 = jax.random.uniform(k5, (B2, C2, H2, W2), dtype=jnp.float32)
    r2 = jax.nn.sigmoid(jax.random.normal(k6, (B2, C2, H2, W2), jnp.float32))
    mu2 = jax.random.normal(k7, (B2, Z), jnp.float32)
    lv2 = jax.random.normal(k8, (B2, Z), jnp.float32) * 0.1

    loss2 = vae_loss(x2, mu2, lv2, r2,
                     target_block_bytes=8 * C2 * H2 * W2 * 4)   # force row_block=8
    jax.block_until_ready(loss2)
    ref2 = _reference(x2, mu2, lv2, r2)
    assert jnp.allclose(loss2, ref2, rtol=1e-5, atol=1e-5), (loss2, ref2)

    # Test 3: bf16 activations streamed natively (cast to f32 in-register).
    xb = x2.astype(jnp.bfloat16)
    rb = r2.astype(jnp.bfloat16)
    loss3 = vae_loss(xb, mu2, lv2, rb,
                     target_block_bytes=16 * C2 * H2 * W2 * 2)  # row_block=16, fold path
    jax.block_until_ready(loss3)
    ref3 = _reference(xb, mu2, lv2, rb)
    assert jnp.allclose(loss3, ref3, rtol=2e-3, atol=2e-3), (loss3, ref3)

    print("KERNEL_OK")
</pallas_src>

<mosaic_0001>
module attributes {stable_mosaic.version = 11 : i64} {
  func.func @_vae_loss_kernel(%arg0: i32, %arg1: i32, %arg2: memref<2x1024xf32, #tpu.memory_space<vmem>>, %arg3: memref<2x1024xf32, #tpu.memory_space<vmem>>, %arg4: memref<2x32xf32, #tpu.memory_space<vmem>>, %arg5: memref<2x32xf32, #tpu.memory_space<vmem>>, %arg6: memref<1x1xf32, #tpu.memory_space<smem>>, %arg7: memref<2x1024xf32, #tpu.memory_space<vmem>>) attributes {dimension_semantics = [#tpu.dimension_semantics<parallel>, #tpu.dimension_semantics<arbitrary>], iteration_bounds = array<i64: 1, 1>, scalar_prefetch = 0 : i64, scratch_operands = 1 : i64, tpu.core_type = #tpu.core_type<tc>, window_params = [{transform_indices = @transform_0, window_bounds = array<i64: 2, 1024>}, {transform_indices = @transform_1, window_bounds = array<i64: 2, 1024>}, {pipeline_mode = #tpu.pipeline_mode<synchronous>, transform_indices = @transform_2, window_bounds = array<i64: 2, 32>}, {pipeline_mode = #tpu.pipeline_mode<synchronous>, transform_indices = @transform_3, window_bounds = array<i64: 2, 32>}, {transform_indices = @transform_4, window_bounds = array<i64: 1, 1>}]} {
    %c0_i32 = arith.constant 0 : i32
    %0 = arith.cmpi eq, %arg1, %c0_i32 : i32
    %1 = arith.extui %0 : i1 to i32
    %c0_i32_0 = arith.constant 0 : i32
    %2 = arith.cmpi ne, %1, %c0_i32_0 : i32
    scf.if %2 {
      %cst_13 = arith.constant 0.000000e+00 : f32
      %24 = vector.broadcast %cst_13 : f32 to vector<2x1024xf32>
      %c0_14 = arith.constant 0 : index
      %c0_15 = arith.constant 0 : index
      %25 = vector.load %arg7[%c0_14, %c0_15] : memref<2x1024xf32, #tpu.memory_space<vmem>>, vector<2x1024xf32>
      tpu.vector_store %arg7[%c0_14, %c0_15], %24 {strides = array<i32>} : memref<2x1024xf32, #tpu.memory_space<vmem>>, vector<2x1024xf32>,
    } else {
    }
    %c0 = arith.constant 0 : index
    %c0_1 = arith.constant 0 : index
    %3 = vector.load %arg2[%c0, %c0_1] : memref<2x1024xf32, #tpu.memory_space<vmem>>, vector<2x1024xf32>
    %c0_2 = arith.constant 0 : index
    %c0_3 = arith.constant 0 : index
    %4 = vector.load %arg3[%c0_2, %c0_3] : memref<2x1024xf32, #tpu.memory_space<vmem>>, vector<2x1024xf32>
    %5 = math.log %4 : vector<2x1024xf32>
    %cst = arith.constant -1.000000e+02 : f32
    %6 = vector.broadcast %cst : f32 to vector<2x1024xf32>
    %7 = arith.maximumf %5, %6 : vector<2x1024xf32>
    %cst_4 = arith.constant 1.000000e+00 : f32
    %8 = vector.broadcast %cst_4 : f32 to vector<2x1024xf32>
    %9 = arith.subf %8, %4 : vector<2x1024xf32>
    %10 = math.log %9 : vector<2x1024xf32>
    %cst_5 = arith.constant -1.000000e+02 : f32
    %11 = vector.broadcast %cst_5 : f32 to vector<2x1024xf32>
    %12 = arith.maximumf %10, %11 : vector<2x1024xf32>
    %13 = arith.subf %7, %12 : vector<2x1024xf32>
    %14 = arith.mulf %3, %13 : vector<2x1024xf32>
    %15 = arith.addf %12, %14 : vector<2x1024xf32>
    %cst_6 = arith.constant 0.000000e+00 : f32
    %16 = vector.broadcast %cst_6 : f32 to vector<2x1024xf32>
    %17 = arith.subf %16, %15 : vector<2x1024xf32>
    %c0_7 = arith.constant 0 : index
    %c0_8 = arith.constant 0 : index
    %18 = vector.load %arg7[%c0_7, %c0_8] : memref<2x1024xf32, #tpu.memory_space<vmem>>, vector<2x1024xf32>
    %19 = arith.addf %18, %17 : vector<2x1024xf32>
    %c0_9 = arith.constant 0 : index
    %c0_10 = arith.constant 0 : index
    %20 = vector.load %arg7[%c0_9, %c0_10] : memref<2x1024xf32, #tpu.memory_space<vmem>>, vector<2x1024xf32>
    tpu.vector_store %arg7[%c0_9, %c0_10], %19 {strides = array<i32>} : memref<2x1024xf32, #tpu.memory_space<vmem>>, vector<2x1024xf32>,
    %c0_i32_11 = arith.constant 0 : i32
    %21 = arith.cmpi eq, %arg1, %c0_i32_11 : i32
    %22 = arith.extui %21 : i1 to i32
    %c0_i32_12 = arith.constant 0 : i32
    %23 = arith.cmpi ne, %22, %c0_i32_12 : i32
    scf.if %23 {
      %c0_13 = arith.constant 0 : index
      %c0_14 = arith.constant 0 : index
      %24 = vector.load %arg7[%c0_13, %c0_14] : memref<2x1024xf32, #tpu.memory_space<vmem>>, vector<2x1024xf32>
      %25 = vector.shape_cast %24 : vector<2x1024xf32> to vector<1x2x1024xf32>
      %cst_15 = arith.constant dense<0.000000e+00> : vector<1xf32>
      %26 = vector.multi_reduction <add>, %25, %cst_15 [1, 2] : vector<1x2x1024xf32> to vector<1xf32>
      %27 = vector.shape_cast %26 : vector<1xf32> to vector<1x1x1xf32>
      %28 = vector.extract %27[0, 0, 0] : f32 from vector<1x1x1xf32>
      %cst_16 = arith.constant 2.048000e+03 : f32
      %29 = arith.divf %28, %cst_16 : f32
      %c0_i32_17 = arith.constant 0 : i32
      %30 = arith.cmpi eq, %arg0, %c0_i32_17 : i32
      %31 = arith.extui %30 : i1 to i32
      %c0_i32_18 = arith.constant 0 : i32
      %32 = arith.cmpi ne, %31, %c0_i32_18 : i32
      scf.if %32 {
        %c0_21 = arith.constant 0 : index
        %c0_22 = arith.constant 0 : index
        %36 = vector.load %arg4[%c0_21, %c0_22] : memref<2x32xf32, #tpu.memory_space<vmem>>, vector<2x32xf32>
        %c0_23 = arith.constant 0 : index
        %c0_24 = arith.constant 0 : index
        %37 = vector.load %arg5[%c0_23, %c0_24] : memref<2x32xf32, #tpu.memory_space<vmem>>, vector<2x32xf32>
        %cst_25 = arith.constant 1.000000e+00 : f32
        %38 = vector.broadcast %cst_25 : f32 to vector<2x32xf32>
        %39 = arith.addf %38, %37 : vector<2x32xf32>
        %40 = arith.mulf %36, %36 : vector<2x32xf32>
        %41 = arith.subf %39, %40 : vector<2x32xf32>
        %42 = math.exp %37 : vector<2x32xf32>
        %43 = arith.subf %41, %42 : vector<2x32xf32>
        %44 = vector.shape_cast %43 : vector<2x32xf32> to vector<1x2x32xf32>
        %cst_26 = arith.constant dense<0.000000e+00> : vector<1xf32>
        %45 = vector.multi_reduction <add>, %44, %cst_26 [1, 2] : vector<1x2x32xf32> to vector<1xf32>
        %46 = vector.shape_cast %45 : vector<1xf32> to vector<1x1x1xf32>
        %47 = vector.extract %46[0, 0, 0] : f32 from vector<1x1x1xf32>
        %cst_27 = arith.constant -5.000000e-01 : f32
        %48 = arith.mulf %cst_27, %47 : f32
        %49 = arith.addf %29, %48 : f32
        %c0_28 = arith.constant 0 : index
        %c0_29 = arith.constant 0 : index
        %50 = memref.load %arg6[%c0_28, %c0_29] : memref<1x1xf32, #tpu.memory_space<smem>>
        memref.store %49, %arg6[%c0_28, %c0_29] : memref<1x1xf32, #tpu.memory_space<smem>>
      } else {
      }
      %c0_i32_19 = arith.constant 0 : i32
      %33 = arith.cmpi ne, %arg0, %c0_i32_19 : i32
      %34 = arith.extui %33 : i1 to i32
      %c0_i32_20 = arith.constant 0 : i32
      %35 = arith.cmpi ne, %34, %c0_i32_20 : i32
      scf.if %35 {
        %c0_21 = arith.constant 0 : index
        %c0_22 = arith.constant 0 : index
        %36 = memref.load %arg6[%c0_21, %c0_22] : memref<1x1xf32, #tpu.memory_space<smem>>
        memref.store %29, %arg6[%c0_21, %c0_22] : memref<1x1xf32, #tpu.memory_space<smem>>
      } else {
      }
    } else {
    }
    return
  }
  func.func @transform_0(%arg0: i32, %arg1: i32) -> (i32, i32) {
    %c1_i32 = arith.constant 1 : i32
    %0 = arith.muli %arg0, %c1_i32 : i32
    %1 = arith.addi %0, %arg1 : i32
    %c0_i32 = arith.constant 0 : i32
    %c0_i32_0 = arith.constant 0 : i32
    return %1, %c0_i32 : i32, i32
  }
  func.func @transform_1(%arg0: i32, %arg1: i32) -> (i32, i32) {
    %c1_i32 = arith.constant 1 : i32
    %0 = arith.muli %arg0, %c1_i32 : i32
    %1 = arith.addi %0, %arg1 : i32
    %c0_i32 = arith.constant 0 : i32
    %c0_i32_0 = arith.constant 0 : i32
    return %1, %c0_i32 : i32, i32
  }
  func.func @transform_2(%arg0: i32, %arg1: i32) -> (i32, i32) {
    %c0_i32 = arith.constant 0 : i32
    %c0_i32_0 = arith.constant 0 : i32
    %c0_i32_1 = arith.constant 0 : i32
    return %c0_i32, %c0_i32_0 : i32, i32
  }
  func.func @transform_3(%arg0: i32, %arg1: i32) -> (i32, i32) {
    %c0_i32 = arith.constant 0 : i32
    %c0_i32_0 = arith.constant 0 : i32
    %c0_i32_1 = arith.constant 0 : i32
    return %c0_i32, %c0_i32_0 : i32, i32
  }
  func.func @transform_4(%arg0: i32, %arg1: i32) -> (i32, i32) {
    %c0_i32 = arith.constant 0 : i32
    %c0_i32_0 = arith.constant 0 : i32
    return %arg0, %c0_i32 : i32, i32
  }
}

</mosaic_0001>

<bundles_post_ra>
// kernel: tpu_custom_call.1
= control target key start
LH: loop header
LB: loop body
LE: loop exit
PB: predicated region body
PF: predicated region fallthrough
CT: control target
= control target key end

     0   :  { %9 = vsyncpa [#allocation4], 0  ;;  %s372_s0 = inlined_call_operand.hbm [shape: f32[2,1024], index: 0, kind: input, shape index: {}]   ;;  %s373_s1 = inlined_call_operand.hbm [shape: f32[2,1024], index: 1, kind: input, shape index: {}]   ;;  %s374_s2 = inlined_call_operand.vmem [shape: f32[2,32], index: 2, kind: input, shape index: {}]   ;;  %s375_s3 = inlined_call_operand.vmem [shape: f32[2,32], index: 3, kind: input, shape index: {}]   ;;  %s376_s4 = inlined_call_operand.hbm [shape: f32[1,1], index: 4, kind: output, shape index: {}]  }
   0x1   :  { %10 = vsyncpa [#allocation7], 0 }
   0x2   :  { %11 = vsyncpa [#allocation5], 0  ;;  %s293_s15 = smov [#allocation3]   ;;  %s294_s17 = smov [#allocation6]  }
   0x3   :  { %s22_s16 = sshll.u32 %s293_s15, 4  ;;  %s36_s18 = sshll.u32 %s294_s17, 4  ;;  %s23_s16 = int_to_ptr.vmem [resolvable:$true] %s22_s16  ;;  %s37_s18 = int_to_ptr.vmem [resolvable:$true] %s36_s18 }
   0x4   :  { %s233_s21 = scalar_lea.hbm %s372_s0, 256 }
   0x5   :  { %p234_p0 = scmp.ne.s32.totalorder %s372_s0, %s233_s21  ;;  %p237_p1 = scmp.lt.u32.totalorder %s233_s21, %s372_s0 }
   0x7   :  { %p239_p2 = pnand %p237_p1, %p234_p0 }
   0x9   :  { %242 = shalt.err (!%p239_p2)
}
   0xa   :  { %s243_s26 = scalar_lea.vmem %s23_s16, 256  ;;  %p248_p4 = scmp.lt.s32.totalorder %s23_s16, %s23_s16 }
   0xb   :  { %p244_p3 = scmp.ne.s32.totalorder %s23_s16, %s243_s26  ;;  %p249_p5 = scmp.lt.s32.totalorder %s243_s26, %s243_s26 }
   0xd   :  { %p250_p6 = por %p249_p5, %p248_p4 }
   0xf   :  { %p251_p7 = pnand %p250_p6, %p244_p3 }
  0x11   :  { %254 = shalt.err (!%p251_p7)
}
  0x12   :  { %25 = dma.hbm_to_vmem [thread:$0]  %s372_s0, 256, %s23_s16, [#allocation4]  }
  0x13   :  { %s255_s5 = scalar_lea.hbm %s373_s1, 256 }
  0x14   :  { %p256_p8 = scmp.ne.s32.totalorder %s373_s1, %s255_s5  ;;  %p259_p9 = scmp.lt.u32.totalorder %s255_s5, %s373_s1 }
  0x16   :  { %p261_p10 = pnand %p259_p9, %p256_p8 }
  0x18   :  { %264 = shalt.err (!%p261_p10)
}
  0x19   :  { %s265_s10 = scalar_lea.vmem %s37_s18, 256  ;;  %p270_p12 = scmp.lt.s32.totalorder %s37_s18, %s37_s18 }
  0x1a   :  { %p266_p11 = scmp.ne.s32.totalorder %s37_s18, %s265_s10  ;;  %p271_p13 = scmp.lt.s32.totalorder %s265_s10, %s265_s10 }
  0x1c   :  { %p272_p0 = por %p271_p13, %p270_p12 }
  0x1e   :  { %p273_p1 = pnand %p272_p0, %p266_p11 }
  0x20   :  { %276 = shalt.err (!%p273_p1)
}
  0x21   :  { %39 = dma.hbm_to_vmem [thread:$0]  %s373_s1, 256, %s37_s18, [#allocation7]  }
  0x22   :  { %287 = dma.done.wait [#allocation4], 256  }
  0x23   :  { %288 = vsyncadd [#allocation4], 4294967040 }
  0x24   :  { %289 = dma.done.wait [#allocation7], 256  }
  0x25   :  { %290 = vsyncadd [#allocation7], 4294967040  ;;  %v60_v0 = vld [vmem:[#allocation6] sm:$0xff]  ;;  %v61_v1 = vld [vmem:[#allocation6 + $0x8] sm:$0xff]  ;;  %v295_v12 = vmov 1983009808   ;;  %v101_v14 = vlaneseq }
  0x26   :  { %223 = vlog2.f32 %v60_v0  ;;  %v68_v2 = vsub.f32 1.0, %v60_v0  ;;  %v69_v3 = vsub.f32 1.0, %v61_v1  ;;  %v99_v13 = vunpack.c.l.s4 %v295_v12  ;;  %v58_v18 = vld [vmem:[#allocation3] sm:$0xff]  ;;  %v59_v20 = vld [vmem:[#allocation3 + $0x8] sm:$0xff]  ;;  %s277_s20 = scalar_lea.hbm %s376_s4, 16 }
  0x27   :  { %225 = vlog2.f32 %v61_v1  ;;  %v102_v23 = vshrl.u32 %v101_v14, 7  ;;  %v172_v29 = vld [vmem:[%s375_s3] sm:$0x3]  ;;  %vm139_vm0 = vcmask 1041408   ;;  %vm179_vm1 = vcmask 254976   ;;  %p278_p2 = scmp.ne.s32.totalorder %s376_s4, %s277_s20  ;;  %p281_p3 = scmp.lt.u32.totalorder %s277_s20, %s376_s4 }
  0x28   :  { %227 = vlog2.f32 %v68_v2  ;;  %v100_v22 = vunpack.c.0.s8 %v99_v13  ;;  %v176_v33 = vmul.f32 1.442695, %v172_v29  ;;  %v171_v45 = vld [vmem:[%s374_s2] sm:$0x3]  ;;  %v173_v51 = vadd.f32 1.0, %v172_v29 }
  0x29   :  { %229 = vlog2.f32 %v69_v3  ;;  %v174_v52 = vmul.f32 %v171_v45, %v171_v45  ;;  %p283_p4 = pnand %p281_p3, %p278_p2 }
  0x2a   :  { %v103_v28 = vsub.s32 %v100_v22, %v102_v23  ;;  %231 = vpow2.f32 %v176_v33 }
  0x2b   :  { %v175_v58 = vsub.f32 %v173_v51, %v174_v52 }
  0x30   :  { %v224_v4 = vpop.eup %223 }
  0x31   :  { %v226_v5 = vpop.eup %225  ;;  %v63_v6 = vmul.f32 0.6931472, %v224_v4 }
  0x32   :  { %v228_v7 = vpop.eup %227  ;;  %v65_v8 = vmul.f32 0.6931472, %v226_v5 }
  0x33   :  { %v230_v9 = vpop.eup %229  ;;  %v66_v10 = vmax.f32 %v63_v6, -100.0  ;;  %v71_v11 = vmul.f32 0.6931472, %v228_v7 }
  0x34   :  { %v67_v15 = vmax.f32 %v65_v8, -100.0  ;;  %v73_v16 = vmul.f32 0.6931472, %v230_v9  ;;  %v232_v59 = vpop.eup %231 }
  0x35   :  { %v74_v17 = vmax.f32 %v71_v11, -100.0  ;;  %v178_v63 = vsub.f32 %v175_v58, %v232_v59 }
  0x36   :  { %v75_v19 = vmax.f32 %v73_v16, -100.0 }
  0x37   :  { %v76_v21 = vsub.f32 %v66_v10, %v74_v17  ;;  %v180_v1 = vsel %vm179_vm1, %v178_v63, 0.0 }
  0x38   :  { %v77_v24 = vsub.f32 %v67_v15, %v75_v19 }
  0x39   :  { %v78_v25 = vmul.f32 %v76_v21, %v58_v18 }
  0x3a   :  { %v79_v26 = vmul.f32 %v77_v24, %v59_v20 }
  0x3b   :  { %v80_v27 = vadd.f32 %v78_v25, %v74_v17 }
  0x3c   :  { %v81_v30 = vadd.f32 %v79_v26, %v75_v19 }
  0x3d   :  { %v82_v31 = vsub.f32 0.0, %v80_v27 }
  0x3e   :  { %v83_v32 = vsub.f32 0.0, %v81_v30 }
  0x3f   :  { %v97_v34 = vcombine.high %v82_v31, %v82_v31  ;;  %v104_v35 = vrot.slane %v82_v31, %v103_v28 }
  0x40   :  { %v114_v36 = vcombine.high %v83_v32, %v83_v32  ;;  %v121_v39 = vrot.slane %v83_v32, %v103_v28 }
  0x41   :  { %v111_v37 = vrot.slane %v97_v34, %v103_v28  ;;  %v112_v38 = vcombine.high %v104_v35, %v104_v35  ;;  %v140_v40 = vsel %vm139_vm0, %v104_v35, 0.0 }
  0x42   :  { %v128_v46 = vrot.slane %v114_v36, %v103_v28  ;;  %v129_v47 = vcombine.high %v121_v39, %v121_v39  ;;  %v147_v50 = vsel %vm139_vm0, %v121_v39, 0.0 }
  0x43   :  { %v113_v41 = vcombine.high %v111_v37, %v111_v37  ;;  %v141_v42 = vsel %vm139_vm0, %v112_v38, 0.0  ;;  %v143_v43 = vsel %vm139_vm0, %v111_v37, 0.0 }
  0x44   :  { %v142_v44 = vadd.f32 %v141_v42, %v140_v40  ;;  %v130_v54 = vcombine.high %v128_v46, %v128_v46  ;;  %v149_v55 = vsel %vm139_vm0, %v129_v47, 0.0  ;;  %v151_v57 = vsel %vm139_vm0, %v128_v46, 0.0 }
  0x45   :  { %v145_v48 = vsel %vm139_vm0, %v113_v41, 0.0 }
  0x46   :  { %v144_v49 = vadd.f32 %v143_v43, %v142_v44  ;;  %v153_v61 = vsel %vm139_vm0, %v130_v54, 0.0 }
  0x48   :  { %v146_v53 = vadd.f32 %v145_v48, %v144_v49 }
  0x4a   :  { %v148_v56 = vadd.f32 %v147_v50, %v146_v53 }
  0x4c   :  { %v150_v60 = vadd.f32 %v149_v55, %v148_v56 }
  0x4e   :  { %v152_v62 = vadd.f32 %v151_v57, %v150_v60 }
  0x50   :  { %v154_v0 = vadd.f32 %v153_v61, %v152_v62 }
  0x52   :  { %155 = vadd.xlane.f32.xlu0 %v154_v0 }
  0x56   :  { %181 = vadd.xlane.f32.xlu0 %v180_v1 }
  0xdf   :  { %v156_v2 = vpop.xlane.xlu0 %155 }
  0xe0   :  { %v157_v3 = vrot.slane %v156_v2, 4 }
  0xe2   :  { %v158_v4 = vadd.f32 %v157_v3, %v156_v2 }
  0xe3   :  { %v182_v5 = vpop.xlane.xlu0 %181 }
  0xe4   :  { %v159_v6 = vrot.slane %v158_v4, 2  ;;  %v183_v7 = vrot.slane %v182_v5, 4 }
  0xe6   :  { %v184_v8 = vadd.f32 %v183_v7, %v182_v5  ;;  %v160_v9 = vadd.f32 %v159_v6, %v158_v4 }
  0xe8   :  { %v185_v10 = vrot.slane %v184_v8, 2  ;;  %v161_v11 = vrot.slane %v160_v9, 1 }
  0xea   :  { %v186_v12 = vadd.f32 %v185_v10, %v184_v8  ;;  %v162_v13 = vadd.f32 %v161_v11, %v160_v9 }
  0xec   :  { %215 = vpush %v162_v13  ;;  %v187_v14 = vrot.slane %v186_v12, 1 }
  0xee   :  { %v188_v15 = vadd.f32 %v187_v14, %v186_v12 }
  0xf0   :  { %217 = vpush %v188_v15 }
 0x11d   :  { %s216_s2 = spop %215 }
 0x11e   :  { %s166_s14 = smul.f32 0.00048828125, %s216_s2 }
 0x121   :  { %s218_s15 = spop %217 }
 0x122   :  { %s190_s16 = smul.f32 -0.5, %s218_s15 }
 0x124   :  { %s191_s17 = sadd.f32 %s190_s16, %s166_s14 }
 0x126   :  { %193 = sst [smem:[#allocation8]] %s191_s17 }
 0x127   :  { %286 = shalt.err (!%p283_p4)
}
 0x128   :  { %s296_s25 = smov [#allocation8]  }
 0x129   :  { %207 = dma.smem_to_hbm %s296_s25, 16, %s376_s4, [#allocation5]  }
 0x12a   :  { %291 = dma.done.wait [#allocation5], 16  }
 0x12b   :  { %292 = vsyncadd [#allocation5], 4294967280 }
 0x12c   :  { %211 = sfence }
 0x12d   :  { %212 = vsyncpa [#allocation4], 1 }
 0x12e   :  { %213 = vsyncpa [#allocation7], 1 }
 0x12f   :  { %214 = vsyncpa [#allocation5], 1 }

</bundles_post_ra>
